<compile_context>
chip_gen: v6e
topology: v6e:2x2x1
jax: 0.10.0
libtpu: 0.0.40
codegen_flags: <defaults>
</compile_context>

<pallas_src>
import functools

import jax
import jax.numpy as jnp
from jax import lax
from jax.experimental import pallas as pl
from jax.experimental.pallas import tpu as pltpu


# ---------------------------------------------------------------------------
# helpers
# ---------------------------------------------------------------------------
def _cdiv(a, b):
    return -(-a // b)


def _round_up(x, m):
    return _cdiv(x, m) * m


def _budgets():
    """Per-generation VMEM budgets: (scoped_limit, target_block, single_block_cap).

    NOTE: pltpu.get_tpu_info() is a trace-time query; under AOT cross-
    compilation it may describe the tracing host, so the fallback and the
    small-VMEM branch are sized for the most constrained part (v7x, 64 MiB)."""
    try:
        phys = int(pltpu.get_tpu_info().vmem_capacity_bytes)
    except Exception:
        phys = 64 << 20
    if phys >= (96 << 20):          # v5e / v6e class: 128 MiB physical VMEM
        scoped = 100 << 20          # scoped-VMEM limit handed to Mosaic
        target = 16 << 20           # preferred x-block size (input-dtype bytes)
        single_cap = 24 << 20       # hard cap on one x block
    else:                           # v7x class: 64 MiB physical VMEM
        scoped = 48 << 20
        target = 6 << 20
        single_cap = 8 << 20
    return scoped, target, single_cap


def _pick_fused_row_tile(BC, per_row_data, per_row_vmem, target, single_cap,
                         scoped_usable):
    """Row tile for the fused path: as big as the budgets allow, but keep an
    even number of >=4 grid steps (>=2 per TensorCore on v7x) when BC allows."""
    rt = min(max(target // per_row_data, 1),
             single_cap // per_row_data,
             scoped_usable // per_row_vmem)
    rt = max(8, (rt // 8) * 8)
    rt = min(rt, _round_up(BC, 8))

    n = _cdiv(BC, rt)
    want = 4 if BC >= 64 else (2 if BC > 8 else 1)
    while n < want and rt > 8:
        rt = max(8, ((rt // 2) // 8) * 8)
        n = _cdiv(BC, rt)
    if n > 1 and n % 2 == 1:
        # try a slightly smaller tile that yields an even step count (megacore)
        rt_even = max(8, _round_up(_cdiv(BC, n + 1), 8))
        if rt_even <= rt and _cdiv(BC, rt_even) % 2 == 0:
            rt = rt_even
    return rt


# ---------------------------------------------------------------------------
# kernels
# ---------------------------------------------------------------------------
def _adain_fused_kernel(x_ref, w_ref, b_ref, o_ref, *, eps, inv_n):
    """Single pass over a (row_tile, HW) block: per-row mean / biased variance
    (centered form, x is already resident in VMEM) then scale+shift.
    w_ref / b_ref are (row_tile, 1) blocks that follow the row axis."""
    x = x_ref[...].astype(jnp.float32)
    mean = jnp.sum(x, axis=-1, keepdims=True) * inv_n
    d = x - mean
    var = jnp.sum(d * d, axis=-1, keepdims=True) * inv_n   # biased variance
    scale = lax.rsqrt(var + eps) * w_ref[...].astype(jnp.float32)
    o_ref[...] = (d * scale + b_ref[...].astype(jnp.float32)).astype(o_ref.dtype)


def _adain_stats_kernel(x_ref, w_ref, b_ref, scale_ref, shift_ref,
                        sum_sc, ssq_sc, *, eps, inv_n, hw, hw_tile, masked):
    """Two-pass path, pass 1: accumulate per-row sum / sum-of-squares over the
    HW tiles (last, 'arbitrary' grid axis); at the last tile fold weight/bias
    into per-row scale/shift so pass 2 only needs (x, scale, shift)."""
    j = pl.program_id(1)

    @pl.when(j == 0)
    def _():
        sum_sc[...] = jnp.zeros_like(sum_sc)
        ssq_sc[...] = jnp.zeros_like(ssq_sc)

    x = x_ref[...].astype(jnp.float32)
    if masked:  # ragged HW: zero the out-of-range lanes of the last tile
        col = j * hw_tile + lax.broadcasted_iota(jnp.int32, x.shape, 1)
        x = jnp.where(col < hw, x, 0.0)
    sum_sc[...] += jnp.sum(x, axis=-1, keepdims=True)
    ssq_sc[...] += jnp.sum(x * x, axis=-1, keepdims=True)

    @pl.when(j == pl.num_programs(1) - 1)
    def _():
        mean = sum_sc[...] * inv_n
        # TODO(synk): E[x^2]-mean^2 can lose precision for large-mean data; a
        # Welford-style tiled accumulation would be more robust here.
        var = jnp.maximum(ssq_sc[...] * inv_n - mean * mean, 0.0)
        scale = lax.rsqrt(var + eps) * w_ref[...].astype(jnp.float32)
        scale_ref[...] = scale
        shift_ref[...] = b_ref[...].astype(jnp.float32) - mean * scale


def _adain_apply_kernel(x_ref, scale_ref, shift_ref, o_ref):
    """Two-pass path, pass 2: y = x * scale + shift (per-row scale/shift)."""
    x = x_ref[...].astype(jnp.float32)
    o_ref[...] = (x * scale_ref[...] + shift_ref[...]).astype(o_ref.dtype)


# ---------------------------------------------------------------------------
# wrapper
# ---------------------------------------------------------------------------
def adaptive_instance_norm_2d(x, weight, bias, *, eps=1e-5,
                              target_block_bytes=None,
                              max_single_block_bytes=None):
    """AdaIN forward. x: (B, C, H, W); weight, bias: (B*C,). Returns (B, C, H, W)."""
    B, C, H, W = x.shape
    BC, HW = B * C, H * W
    assert weight.shape == (BC,) and bias.shape == (BC,)

    dtype_bytes = jnp.dtype(x.dtype).itemsize
    scoped_cap, gen_target, gen_single = _budgets()
    target = gen_target if target_block_bytes is None else int(target_block_bytes)
    single_cap = gen_single if max_single_block_bytes is None else int(max_single_block_bytes)
    scoped_usable = scoped_cap - (4 << 20)   # headroom for Mosaic internals

    x2d = x.reshape(BC, HW)                  # contiguous view, no copy
    w2d = weight.reshape(BC, 1).astype(jnp.float32)
    b2d = bias.reshape(BC, 1).astype(jnp.float32)

    # VMEM cost per row of a fused block: double-buffered in+out in the input
    # dtype, one (or two, for sub-32-bit inputs) f32 block temporaries, plus
    # the lane-padded (row_tile, 1) weight/bias blocks (512 B/row/buffer).
    per_row_data = HW * dtype_bytes
    per_row_vmem = HW * (4 * dtype_bytes + (4 if dtype_bytes >= 4 else 8)) + 2048

    fused_ok = (8 * per_row_data <= single_cap) and (8 * per_row_vmem <= scoped_usable)

    # ---------------- fused single-pass path (whole HW row in one block) -----
    if fused_ok:
        row_tile = _pick_fused_row_tile(BC, per_row_data, per_row_vmem,
                                        target, single_cap, scoped_usable)
        n_row = _cdiv(BC, row_tile)          # ragged last block handled by Pallas
        out2d = pl.pallas_call(
            functools.partial(_adain_fused_kernel,
                              eps=float(eps), inv_n=1.0 / float(HW)),
            out_shape=jax.ShapeDtypeStruct((BC, HW), x.dtype),
            grid_spec=pltpu.PrefetchScalarGridSpec(
                num_scalar_prefetch=0,
                grid=(n_row,),
                in_specs=[
                    pl.BlockSpec((row_tile, HW), lambda i: (i, 0)),
                    pl.BlockSpec((row_tile, 1), lambda i: (i, 0)),
                    pl.BlockSpec((row_tile, 1), lambda i: (i, 0)),
                ],
                out_specs=pl.BlockSpec((row_tile, HW), lambda i: (i, 0)),
            ),
            compiler_params=pltpu.CompilerParams(
                dimension_semantics=("parallel",),
                vmem_limit_bytes=int(scoped_cap),
            ),
        )(x2d, w2d, b2d)
        return out2d.reshape(B, C, H, W)

    # ---------------- two-pass path (one full HW row does not fit) -----------
    # Pass 1 accumulates per-row stats over HW tiles and emits scale/shift;
    # pass 2 re-streams x and normalizes. No padding: ragged HW is masked
    # in-kernel, ragged BC relies on Pallas' discarded out-of-bounds writes.
    row_tile = 8
    per_elem_two = 4 * dtype_bytes + (4 if dtype_bytes >= 4 else 8)
    hw_cap = max(128, (scoped_usable // (row_tile * per_elem_two)) // 128 * 128)
    hw_tgt = max(128, (target // (row_tile * dtype_bytes)) // 128 * 128)
    hw_tile = min(hw_cap, hw_tgt, _round_up(HW, 128))
    n_row = _cdiv(BC, row_tile)
    n_hw = _cdiv(HW, hw_tile)
    masked = (HW % hw_tile) != 0

    scale2d, shift2d = pl.pallas_call(
        functools.partial(_adain_stats_kernel, eps=float(eps),
                          inv_n=1.0 / float(HW), hw=HW, hw_tile=hw_tile,
                          masked=masked),
        out_shape=(jax.ShapeDtypeStruct((BC, 1), jnp.float32),
                   jax.ShapeDtypeStruct((BC, 1), jnp.float32)),
        grid_spec=pltpu.PrefetchScalarGridSpec(
            num_scalar_prefetch=0,
            grid=(n_row, n_hw),
            in_specs=[
                pl.BlockSpec((row_tile, hw_tile), lambda i, j: (i, j)),
                pl.BlockSpec((row_tile, 1), lambda i, j: (i, 0)),
                pl.BlockSpec((row_tile, 1), lambda i, j: (i, 0)),
            ],
            out_specs=(pl.BlockSpec((row_tile, 1), lambda i, j: (i, 0)),
                       pl.BlockSpec((row_tile, 1), lambda i, j: (i, 0))),
            scratch_shapes=[pltpu.VMEM((row_tile, 1), jnp.float32),
                            pltpu.VMEM((row_tile, 1), jnp.float32)],
        ),
        compiler_params=pltpu.CompilerParams(
            dimension_semantics=("parallel", "arbitrary"),
            vmem_limit_bytes=int(scoped_cap),
        ),
    )(x2d, w2d, b2d)

    out2d = pl.pallas_call(
        _adain_apply_kernel,
        out_shape=jax.ShapeDtypeStruct((BC, HW), x.dtype),
        grid_spec=pltpu.PrefetchScalarGridSpec(
            num_scalar_prefetch=0,
            grid=(n_row, n_hw),
            in_specs=[
                pl.BlockSpec((row_tile, hw_tile), lambda i, j: (i, j)),
                pl.BlockSpec((row_tile, 1), lambda i, j: (i, 0)),
                pl.BlockSpec((row_tile, 1), lambda i, j: (i, 0)),
            ],
            out_specs=pl.BlockSpec((row_tile, hw_tile), lambda i, j: (i, j)),
        ),
        compiler_params=pltpu.CompilerParams(
            dimension_semantics=("parallel", "parallel"),
            vmem_limit_bytes=int(scoped_cap),
        ),
    )(x2d, scale2d, shift2d)
    return out2d.reshape(B, C, H, W)


# ---------------------------------------------------------------------------
# reference + self-test
# ---------------------------------------------------------------------------
def _reference(x, weight, bias, eps=1e-5):
    B, C, H, W = x.shape
    x2d = x.reshape(B * C, H * W).astype(jnp.float32)
    mean = jnp.mean(x2d, axis=-1, keepdims=True)
    var = jnp.mean((x2d - mean) ** 2, axis=-1, keepdims=True)
    out = (x2d - mean) / jnp.sqrt(var + eps)
    out = out * weight[:, None] + bias[:, None]
    return out.reshape(B, C, H, W).astype(x.dtype)


if __name__ == "__main__":
    key = jax.random.PRNGKey(0)
    kx, kw, kb = jax.random.split(key, 3)

    # 1) fused single-pass path (BC multiple of 8)
    B, C, H, W = 2, 4, 16, 16
    x = jax.random.normal(kx, (B, C, H, W), dtype=jnp.float32)
    weight = 1.0 + 0.1 * jax.random.normal(kw, (B * C,), dtype=jnp.float32)
    bias = 0.1 * jax.random.normal(kb, (B * C,), dtype=jnp.float32)
    out = jax.block_until_ready(adaptive_instance_norm_2d(x, weight, bias, eps=1e-5))
    ref = _reference(x, weight, bias, eps=1e-5)
    assert out.shape == (B, C, H, W)
    assert jnp.allclose(out, ref, atol=1e-5, rtol=1e-5), "fused path mismatch"

    # 2) fused path with ragged BC (partial last row block, no host padding)
    C2 = 5
    x2 = jax.random.normal(kx, (B, C2, H, W), dtype=jnp.float32)
    w2 = 1.0 + 0.1 * jax.random.normal(kw, (B * C2,), dtype=jnp.float32)
    b2 = 0.1 * jax.random.normal(kb, (B * C2,), dtype=jnp.float32)
    out2 = jax.block_until_ready(adaptive_instance_norm_2d(x2, w2, b2, eps=1e-5))
    ref2 = _reference(x2, w2, b2, eps=1e-5)
    assert jnp.allclose(out2, ref2, atol=1e-5, rtol=1e-5), "ragged-BC fused mismatch"

    # 3) two-pass fallback with ragged HW (forced via tiny block budgets):
    #    HW = 30*34 = 1020 is not a multiple of the 256-wide hw tiles, so the
    #    in-kernel lane masking of the stats pass is exercised.
    H3, W3 = 30, 34
    x3 = jax.random.normal(kx, (B, C, H3, W3), dtype=jnp.float32)
    out3 = jax.block_until_ready(
        adaptive_instance_norm_2d(x3, weight, bias, eps=1e-5,
                                  target_block_bytes=8 * 1024,
                                  max_single_block_bytes=0))
    ref3 = _reference(x3, weight, bias, eps=1e-5)
    assert jnp.allclose(out3, ref3, atol=1e-5, rtol=1e-5), "two-pass path mismatch"

    print("KERNEL_OK")
</pallas_src>

<mosaic_0001>
module attributes {stable_mosaic.version = 11 : i64} {
  func.func @_adain_fused_kernel(%arg0: i32, %arg1: memref<8x256xf32, #tpu.memory_space<vmem>>, %arg2: memref<8x1xf32, #tpu.memory_space<vmem>>, %arg3: memref<8x1xf32, #tpu.memory_space<vmem>>, %arg4: memref<8x256xf32, #tpu.memory_space<vmem>>) attributes {dimension_semantics = [#tpu.dimension_semantics<parallel>], iteration_bounds = array<i64: 1>, scalar_prefetch = 0 : i64, scratch_operands = 0 : i64, tpu.core_type = #tpu.core_type<tc>, window_params = [{transform_indices = @transform_0, window_bounds = array<i64: 8, 256>}, {transform_indices = @transform_1, window_bounds = array<i64: 8, 1>}, {transform_indices = @transform_2, window_bounds = array<i64: 8, 1>}, {transform_indices = @transform_3, window_bounds = array<i64: 8, 256>}]} {
    %c0 = arith.constant 0 : index
    %c0_0 = arith.constant 0 : index
    %0 = vector.load %arg1[%c0, %c0_0] : memref<8x256xf32, #tpu.memory_space<vmem>>, vector<8x256xf32>
    %cst = arith.constant dense<0.000000e+00> : vector<8xf32>
    %1 = vector.multi_reduction <add>, %0, %cst [1] : vector<8x256xf32> to vector<8xf32>
    %2 = vector.shape_cast %1 : vector<8xf32> to vector<8x1xf32>
    %cst_1 = arith.constant 3.906250e-03 : f32
    %3 = vector.broadcast %cst_1 : f32 to vector<8x1xf32>
    %4 = arith.mulf %2, %3 : vector<8x1xf32>
    %5 = vector.broadcast %4 : vector<8x1xf32> to vector<8x256xf32>
    %6 = arith.subf %0, %5 : vector<8x256xf32>
    %7 = arith.mulf %6, %6 : vector<8x256xf32>
    %cst_2 = arith.constant dense<0.000000e+00> : vector<8xf32>
    %8 = vector.multi_reduction <add>, %7, %cst_2 [1] : vector<8x256xf32> to vector<8xf32>
    %9 = vector.shape_cast %8 : vector<8xf32> to vector<8x1xf32>
    %cst_3 = arith.constant 3.906250e-03 : f32
    %10 = vector.broadcast %cst_3 : f32 to vector<8x1xf32>
    %11 = arith.mulf %9, %10 : vector<8x1xf32>
    %cst_4 = arith.constant 9.99999974E-6 : f32
    %12 = vector.broadcast %cst_4 : f32 to vector<8x1xf32>
    %13 = arith.addf %11, %12 : vector<8x1xf32>
    %14 = math.rsqrt %13 : vector<8x1xf32>
    %c0_5 = arith.constant 0 : index
    %c0_6 = arith.constant 0 : index
    %15 = vector.load %arg2[%c0_5, %c0_6] : memref<8x1xf32, #tpu.memory_space<vmem>>, vector<8x1xf32>
    %16 = arith.mulf %14, %15 : vector<8x1xf32>
    %17 = vector.broadcast %16 : vector<8x1xf32> to vector<8x256xf32>
    %18 = arith.mulf %6, %17 : vector<8x256xf32>
    %c0_7 = arith.constant 0 : index
    %c0_8 = arith.constant 0 : index
    %19 = vector.load %arg3[%c0_7, %c0_8] : memref<8x1xf32, #tpu.memory_space<vmem>>, vector<8x1xf32>
    %20 = vector.broadcast %19 : vector<8x1xf32> to vector<8x256xf32>
    %21 = arith.addf %18, %20 : vector<8x256xf32>
    %c0_9 = arith.constant 0 : index
    %c0_10 = arith.constant 0 : index
    %22 = vector.load %arg4[%c0_9, %c0_10] : memref<8x256xf32, #tpu.memory_space<vmem>>, vector<8x256xf32>
    tpu.vector_store %arg4[%c0_9, %c0_10], %21 {strides = array<i32>} : memref<8x256xf32, #tpu.memory_space<vmem>>, vector<8x256xf32>,
    return
  }
  func.func @transform_0(%arg0: i32) -> (i32, i32) {
    %c0_i32 = arith.constant 0 : i32
    %c0_i32_0 = arith.constant 0 : i32
    return %arg0, %c0_i32 : i32, i32
  }
  func.func @transform_1(%arg0: i32) -> (i32, i32) {
    %c0_i32 = arith.constant 0 : i32
    %c0_i32_0 = arith.constant 0 : i32
    return %arg0, %c0_i32 : i32, i32
  }
  func.func @transform_2(%arg0: i32) -> (i32, i32) {
    %c0_i32 = arith.constant 0 : i32
    %c0_i32_0 = arith.constant 0 : i32
    return %arg0, %c0_i32 : i32, i32
  }
  func.func @transform_3(%arg0: i32) -> (i32, i32) {
    %c0_i32 = arith.constant 0 : i32
    %c0_i32_0 = arith.constant 0 : i32
    return %arg0, %c0_i32 : i32, i32
  }
}

</mosaic_0001>

<bundles_post_ra>
// kernel: tpu_custom_call.1
= control target key start
LH: loop header
LB: loop body
LE: loop exit
PB: predicated region body
PF: predicated region fallthrough
CT: control target
= control target key end

     0   :  { %s129_s0 = inlined_call_operand.vmem [shape: f32[8,256], index: 0, kind: input, shape index: {}]   ;;  %s130_s1 = inlined_call_operand.vmem [shape: f32[8,1], index: 1, kind: input, shape index: {}]   ;;  %s131_s2 = inlined_call_operand.vmem [shape: f32[8,1], index: 2, kind: input, shape index: {}]   ;;  %s132_s3 = inlined_call_operand.hbm [shape: f32[8,256], index: 3, kind: output, shape index: {}]  }
   0x1   :  { %v15_v0 = vld [vmem:[%s129_s0] sm:$0xff]  ;;  %v16_v1 = vld [vmem:[%s129_s0 + $0x8] sm:$0xff] }
   0x2   :  { %8 = vsyncpa [#allocation3], 0  ;;  %v17_v2 = vadd.f32 %v16_v1, %v15_v0  ;;  %v92_v10 = vmov 0   ;;  %v31_v14 = vld [vmem:[%s130_s1] sm:$0xff]  ;;  %s93_s19 = smov [#allocation2]  }
   0x3   :  { %66 = vset.pattern.permute.xlu1 %v92_v10  ;;  %67 = vset.pattern.permute.xlu0 %v92_v10  ;;  %v40_v17 = vld [vmem:[%s131_s2] sm:$0xff]  ;;  %s56_s20 = sshll.u32 %s93_s19, 4  ;;  %s57_s20 = int_to_ptr.vmem [resolvable:$true] %s56_s20 }
   0x4   :  { %18 = vadd.xlane.f32.xlu0 %v17_v2  ;;  %s70_s1 = scalar_lea.vmem %s57_s20, 256  ;;  %p75_p1 = scmp.lt.s32.totalorder %s57_s20, %s57_s20 }
   0x5   :  { %p71_p0 = scmp.ne.s32.totalorder %s57_s20, %s70_s1  ;;  %p76_p2 = scmp.lt.s32.totalorder %s70_s1, %s70_s1 }
   0x7   :  { %p77_p3 = por %p76_p2, %p75_p1 }
   0x9   :  { %p78_p4 = pnand %p77_p3, %p71_p0 }
  0x8d   :  { %v19_v3 = vpop.xlane.xlu0 %18 }
  0x8e   :  { %v20_v4 = vmul.f32 0.00390625, %v19_v3 }
  0x90   :  { %v21_v5 = vsub.f32 %v15_v0, %v20_v4  ;;  %v22_v6 = vsub.f32 %v16_v1, %v20_v4 }
  0x92   :  { %v23_v7 = vmul.f32 %v21_v5, %v21_v5  ;;  %v24_v8 = vmul.f32 %v22_v6, %v22_v6 }
  0x94   :  { %v25_v9 = vadd.f32 %v24_v8, %v23_v7 }
  0x96   :  { %26 = vadd.xlane.f32.xlu0 %v25_v9 }
 0x11f   :  { %v27_v11 = vpop.xlane.xlu0 %26 }
 0x120   :  { %v28_v12 = vmul.f32 0.00390625, %v27_v11 }
 0x122   :  { %v29_v13 = vadd.f32 1e-05, %v28_v12 }
 0x124   :  { %68 = vrsqrt.f32 %v29_v13 }
 0x131   :  { %v69_v15 = vpop.eup %68 }
 0x132   :  { %v32_v16 = vmul.f32 %v69_v15, %v31_v14 }
 0x134   :  { %35 = vperm.xlu1 %66, %v32_v16  }
 0x138   :  { %43 = vperm.xlu1 %66, %v40_v17  }
 0x1af   :  { %v36_v18 = vpop.permute.xlu1 %35 }
 0x1b0   :  { %v38_v19 = vmul.f32 %v36_v18, %v21_v5  ;;  %v39_v20 = vmul.f32 %v36_v18, %v22_v6 }
 0x1b3   :  { %v44_v21 = vpop.permute.xlu1 %43 }
 0x1b4   :  { %v46_v22 = vadd.f32 %v44_v21, %v38_v19  ;;  %v47_v23 = vadd.f32 %v44_v21, %v39_v20 }
 0x1b6   :  { %48 = vst [vmem:[#allocation2] sm:$0xff] %v46_v22  ;;  %49 = vst [vmem:[#allocation2 + $0x8] sm:$0xff] %v47_v23 }
 0x1b7   :  { %81 = shalt.err (!%p78_p4)
}
 0x1b8   :  { %59 = dma.vmem_to_hbm [thread:$0]  %s57_s20, 256, %s132_s3, [#allocation3]  }
 0x1b9   :  { %90 = dma.done.wait [#allocation3], 256  }
 0x1ba   :  { %91 = vsyncadd [#allocation3], 4294967040 }
 0x1bb   :  { %63 = vsyncpa [#allocation3], 1 }

</bundles_post_ra>
